<compile_context>
chip_gen: v5e
topology: v5e:2x2
jax: 0.10.0
libtpu: 0.0.40
codegen_flags: <defaults>
</compile_context>

<pallas_src>
import functools

import numpy as np
import jax
import jax.numpy as jnp
from jax import lax
from jax.experimental import pallas as pl
from jax.experimental.pallas import tpu as pltpu

_SQRT2 = float(np.sqrt(2.0))
_LANES = 128


def _round_up(x, m):
    return -(-x // m) * m


def _wavelet_reg_kernel(packed_ref, out_ref, prod_ref, *, n_shifts, n_h_rows,
                        n_g_rows, w_g0, lambdas):
    """packed_ref: (R, 128) f32 VMEM
           row 0              : h   (zero padded past L_h)
           row 1              : g   (zero padded past L_g)
           rows 2..1+n_g_rows : constant moment rows pNorm(p)*r**(p-1),
                                zeroed past lane L_g
       out_ref : (1,) f32 SMEM -- scalar loss.
       prod_ref: (R2, 128) f32 VMEM scratch, R2 >= n_h_rows + n_g_rows.
    """
    lam0, lam1, lam2 = lambdas
    data = packed_ref[...]
    h = data[0:1, :]
    g = data[1:2, :]

    # Stack every per-term elementwise product into sublanes of the scratch.
    prod_ref[...] = jnp.zeros_like(prod_ref)
    # row 0: h                      -> lane-sum = sum(h)                  (l1)
    prod_ref[0:1, :] = h
    # row 1: h * h                  -> lane-sum = <h, h>                  (l3)
    prod_ref[1:2, :] = h * h
    # rows 2..1+n_shifts: roll(h,2k) * h -> <h[2k:], h[:L-2k]>            (l4)
    # (lane wrap lands on zero padding because L_h + 2k <= 128)
    for k in range(1, n_shifts + 1):
        h_shift = pltpu.roll(data, shift=_LANES - 2 * k, axis=1)[0:1, :]
        prod_ref[1 + k:2 + k, :] = h_shift * h
    # rows n_h_rows..: moment rows * g -> pNorm(p) * <r**(p-1), g>    (l2, l5)
    prod_ref[n_h_rows:n_h_rows + n_g_rows, :] = data[2:2 + n_g_rows, :] * g

    # One batched lane reduction yields every dot product at once.
    dots = jnp.sum(prod_ref[...], axis=-1, keepdims=True)          # (R2, 1)

    # Per-row target / lambda weight.  Padding rows reduce to exactly 0.
    n_pad_rows = prod_ref.shape[0]
    ridx = lax.broadcasted_iota(jnp.int32, (n_pad_rows, 1), 0)
    targets = jnp.where(ridx == 0, _SQRT2, jnp.where(ridx == 1, 1.0, 0.0))
    weights = jnp.where(ridx == 0, lam0,
               jnp.where(ridx < n_h_rows, lam1,
                jnp.where(ridx == n_h_rows, w_g0, lam2)))

    out_ref[0] = jnp.sum(weights * (dots - targets) ** 2)


def _moment_rows_np(L_g):
    """Constant rows p = 1..L_g//2 of pNorm(p) * r**(p-1), zero past lane L_g."""
    n_mom = L_g // 2
    if n_mom == 0:
        # No vanishing-moment terms; keep one plain ones row so sum(g) (l2)
        # still comes out of the same batched reduction.
        rows = np.zeros((1, _LANES), np.float64)
        rows[0, :L_g] = 1.0
        return rows.astype(np.float32), 0
    r = np.arange(L_g, dtype=np.float64)
    rows = np.zeros((n_mom, _LANES), np.float64)
    for p in range(1, n_mom + 1):
        rows[p - 1, :L_g] = (np.sqrt(2.0) / 2.0 ** p) * r ** (p - 1)
    return rows.astype(np.float32), n_mom


@functools.partial(jax.jit, static_argnums=(2,))
def _wavelet_reg(h, g, lambdas):
    assert h.ndim == 1 and g.ndim == 1
    L_h, L_g = h.shape[0], g.shape[0]
    assert L_h <= 64, "h must fit one 128-lane row with room for the 2k shifts"
    assert L_g <= _LANES, "g must fit one 128-lane row"

    n_shifts = (L_h - 1) // 2                 # l4 terms, k = 1..n_shifts
    moments_np, n_mom = _moment_rows_np(L_g)  # pre-scaled l5 moment rows
    n_g_rows = moments_np.shape[0]
    n_h_rows = 2 + n_shifts                   # sum(h), <h,h>, shifted dots
    n_rows = n_h_rows + n_g_rows
    lam0, lam1, lam2 = (float(x) for x in lambdas)
    # p=1 moment row carries both l2 and the first l5 term:
    #   lam0 * sum(g)^2 + lam2 * (sum(g)*sqrt2/2)^2 = (2*lam0 + lam2) * d1^2
    w_g0 = (2.0 * lam0 + lam2) if n_mom >= 1 else lam0

    # Single packed input (one DMA): h, g and the constant moment rows.
    in_rows = _round_up(2 + n_g_rows, 8)
    h_row = jnp.pad(h.astype(jnp.float32), (0, _LANES - L_h)).reshape(1, _LANES)
    g_row = jnp.pad(g.astype(jnp.float32), (0, _LANES - L_g)).reshape(1, _LANES)
    pieces = [h_row, g_row, jnp.asarray(moments_np)]
    if in_rows > 2 + n_g_rows:
        pieces.append(jnp.zeros((in_rows - 2 - n_g_rows, _LANES), jnp.float32))
    packed = jnp.concatenate(pieces, axis=0)

    scratch_rows = _round_up(n_rows, 8)

    kernel = functools.partial(
        _wavelet_reg_kernel,
        n_shifts=n_shifts, n_h_rows=n_h_rows, n_g_rows=n_g_rows,
        w_g0=w_g0, lambdas=(lam0, lam1, lam2))

    out = pl.pallas_call(
        kernel,
        out_shape=jax.ShapeDtypeStruct((1,), jnp.float32),
        in_specs=[pl.BlockSpec(memory_space=pltpu.MemorySpace.VMEM)],
        out_specs=pl.BlockSpec(memory_space=pltpu.MemorySpace.SMEM),
        scratch_shapes=[pltpu.VMEM((scratch_rows, _LANES), jnp.float32)],
        cost_estimate=pl.CostEstimate(
            flops=4 * scratch_rows * _LANES,
            transcendentals=0,
            bytes_accessed=(in_rows * _LANES + 1) * 4),
    )(packed)
    return out[0]


def orthonormal_wavelet_regularization(h, g, lambdas=(1.0, 1.0, 1.0)):
    """JAX/Pallas equivalent of OrthonormalWaveletRegularization.forward(h, g)."""
    # TODO(synk): if many (h, g) filter pairs are scored per step, add a
    # batched grid axis ('parallel') instead of calling this once per pair.
    # Note: lambdas are compile-time constants (recompile if swept).
    return _wavelet_reg(h, g, tuple(float(x) for x in lambdas))


def _reference(h, g, lambdas=(1.0, 1.0, 1.0)):
    """Pure-numpy port of the PyTorch forward (for verification)."""
    h = np.asarray(h, np.float32)
    g = np.asarray(g, np.float32)
    r = np.arange(len(g), dtype=np.float32)
    l1 = (h.sum() - np.sqrt(2)) ** 2
    l2 = g.sum() ** 2
    l3 = (h @ h - 1.0) ** 2
    l4 = sum((h[2 * k:] @ h[:len(h) - 2 * k]) ** 2
             for k in range(1, (len(h) - 1) // 2 + 1))
    l5 = sum(((r ** (p - 1) @ g) * (np.sqrt(2) / 2 ** p)) ** 2
             for p in range(1, len(g) // 2 + 1))
    return lambdas[0] * (l1 + l2) + lambdas[1] * (l3 + l4) + lambdas[2] * l5


if __name__ == "__main__":
    key = jax.random.PRNGKey(0)
    kh, kg = jax.random.split(key)
    L = 8  # typical short wavelet filter length (e.g. db4)
    h = jax.random.normal(kh, (L,), dtype=jnp.float32)
    g = jax.random.normal(kg, (L,), dtype=jnp.float32)

    loss = orthonormal_wavelet_regularization(h, g, lambdas=(1.0, 1.0, 1.0))
    loss = jax.block_until_ready(loss)

    ref = _reference(np.asarray(h), np.asarray(g))
    np.testing.assert_allclose(np.asarray(loss), ref, rtol=1e-4, atol=1e-4)

    print("KERNEL_OK")
</pallas_src>

<mosaic_0001>
module attributes {stable_mosaic.version = 11 : i64} {
  func.func @_wavelet_reg_kernel(%arg0: memref<8x128xf32, #tpu.memory_space<vmem>>, %arg1: memref<1xf32, #tpu.memory_space<smem>>, %arg2: memref<16x128xf32, #tpu.memory_space<vmem>>) attributes {dimension_semantics = [], scalar_prefetch = 0 : i64, scratch_operands = 1 : i64, tpu.core_type = #tpu.core_type<tc>} {
    %c0 = arith.constant 0 : index
    %c0_0 = arith.constant 0 : index
    %0 = vector.load %arg0[%c0, %c0_0] : memref<8x128xf32, #tpu.memory_space<vmem>>, vector<8x128xf32>
    %1 = vector.extract_strided_slice %0 {offsets = [0, 0], sizes = [1, 128], strides = [1, 1]} : vector<8x128xf32> to vector<1x128xf32>
    %2 = vector.extract_strided_slice %0 {offsets = [1, 0], sizes = [1, 128], strides = [1, 1]} : vector<8x128xf32> to vector<1x128xf32>
    %cst = arith.constant 0.000000e+00 : f32
    %3 = vector.broadcast %cst : f32 to vector<16x128xf32>
    %c0_1 = arith.constant 0 : index
    %c0_2 = arith.constant 0 : index
    %4 = vector.load %arg2[%c0_1, %c0_2] : memref<16x128xf32, #tpu.memory_space<vmem>>, vector<16x128xf32>
    tpu.vector_store %arg2[%c0_1, %c0_2], %3 {strides = array<i32>} : memref<16x128xf32, #tpu.memory_space<vmem>>, vector<16x128xf32>,
    %c0_3 = arith.constant 0 : index
    %c0_4 = arith.constant 0 : index
    %5 = vector.load %arg2[%c0_3, %c0_4] : memref<16x128xf32, #tpu.memory_space<vmem>>, vector<1x128xf32>
    tpu.vector_store %arg2[%c0_3, %c0_4], %1 {strides = array<i32>} : memref<16x128xf32, #tpu.memory_space<vmem>>, vector<1x128xf32>,
    %6 = arith.mulf %1, %1 : vector<1x128xf32>
    %c1 = arith.constant 1 : index
    %c0_5 = arith.constant 0 : index
    %7 = vector.load %arg2[%c1, %c0_5] : memref<16x128xf32, #tpu.memory_space<vmem>>, vector<1x128xf32>
    tpu.vector_store %arg2[%c1, %c0_5], %6 {strides = array<i32>} : memref<16x128xf32, #tpu.memory_space<vmem>>, vector<1x128xf32>,
    %c126_i32 = arith.constant 126 : i32
    %8 = tpu.dynamic_rotate %0 by %c126_i32 dim 1 : vector<8x128xf32>, i32 -> vector<8x128xf32>
    %9 = vector.extract_strided_slice %8 {offsets = [0, 0], sizes = [1, 128], strides = [1, 1]} : vector<8x128xf32> to vector<1x128xf32>
    %10 = arith.mulf %9, %1 : vector<1x128xf32>
    %c2 = arith.constant 2 : index
    %c0_6 = arith.constant 0 : index
    %11 = vector.load %arg2[%c2, %c0_6] : memref<16x128xf32, #tpu.memory_space<vmem>>, vector<1x128xf32>
    tpu.vector_store %arg2[%c2, %c0_6], %10 {strides = array<i32>} : memref<16x128xf32, #tpu.memory_space<vmem>>, vector<1x128xf32>,
    %c124_i32 = arith.constant 124 : i32
    %12 = tpu.dynamic_rotate %0 by %c124_i32 dim 1 : vector<8x128xf32>, i32 -> vector<8x128xf32>
    %13 = vector.extract_strided_slice %12 {offsets = [0, 0], sizes = [1, 128], strides = [1, 1]} : vector<8x128xf32> to vector<1x128xf32>
    %14 = arith.mulf %13, %1 : vector<1x128xf32>
    %c3 = arith.constant 3 : index
    %c0_7 = arith.constant 0 : index
    %15 = vector.load %arg2[%c3, %c0_7] : memref<16x128xf32, #tpu.memory_space<vmem>>, vector<1x128xf32>
    tpu.vector_store %arg2[%c3, %c0_7], %14 {strides = array<i32>} : memref<16x128xf32, #tpu.memory_space<vmem>>, vector<1x128xf32>,
    %c122_i32 = arith.constant 122 : i32
    %16 = tpu.dynamic_rotate %0 by %c122_i32 dim 1 : vector<8x128xf32>, i32 -> vector<8x128xf32>
    %17 = vector.extract_strided_slice %16 {offsets = [0, 0], sizes = [1, 128], strides = [1, 1]} : vector<8x128xf32> to vector<1x128xf32>
    %18 = arith.mulf %17, %1 : vector<1x128xf32>
    %c4 = arith.constant 4 : index
    %c0_8 = arith.constant 0 : index
    %19 = vector.load %arg2[%c4, %c0_8] : memref<16x128xf32, #tpu.memory_space<vmem>>, vector<1x128xf32>
    tpu.vector_store %arg2[%c4, %c0_8], %18 {strides = array<i32>} : memref<16x128xf32, #tpu.memory_space<vmem>>, vector<1x128xf32>,
    %20 = vector.extract_strided_slice %0 {offsets = [2, 0], sizes = [4, 128], strides = [1, 1]} : vector<8x128xf32> to vector<4x128xf32>
    %21 = vector.broadcast %2 : vector<1x128xf32> to vector<4x128xf32>
    %22 = arith.mulf %20, %21 : vector<4x128xf32>
    %c5 = arith.constant 5 : index
    %c0_9 = arith.constant 0 : index
    %23 = vector.load %arg2[%c5, %c0_9] : memref<16x128xf32, #tpu.memory_space<vmem>>, vector<4x128xf32>
    tpu.vector_store %arg2[%c5, %c0_9], %22 {strides = array<i32>} : memref<16x128xf32, #tpu.memory_space<vmem>>, vector<4x128xf32>,
    %c0_10 = arith.constant 0 : index
    %c0_11 = arith.constant 0 : index
    %24 = vector.load %arg2[%c0_10, %c0_11] : memref<16x128xf32, #tpu.memory_space<vmem>>, vector<16x128xf32>
    %cst_12 = arith.constant dense<0.000000e+00> : vector<16xf32>
    %25 = vector.multi_reduction <add>, %24, %cst_12 [1] : vector<16x128xf32> to vector<16xf32>
    %26 = vector.shape_cast %25 : vector<16xf32> to vector<16x1xf32>
    %27 = tpu.iota {dimensions = array<i32: 0>} : vector<16x1xi32>
    %c0_i32 = arith.constant 0 : i32
    %28 = vector.broadcast %c0_i32 : i32 to vector<16x1xi32>
    %29 = arith.cmpi eq, %27, %28 : vector<16x1xi32>
    %c1_i32 = arith.constant 1 : i32
    %30 = vector.broadcast %c1_i32 : i32 to vector<16x1xi32>
    %31 = arith.cmpi eq, %27, %30 : vector<16x1xi32>
    %cst_13 = arith.constant 1.000000e+00 : f32
    %cst_14 = arith.constant 0.000000e+00 : f32
    %32 = vector.broadcast %cst_13 : f32 to vector<16x1xf32>
    %33 = vector.broadcast %cst_14 : f32 to vector<16x1xf32>
    %34 = arith.select %31, %32, %33 : vector<16x1xi1>, vector<16x1xf32>
    %cst_15 = arith.constant 1.41421354 : f32
    %35 = vector.broadcast %cst_15 : f32 to vector<16x1xf32>
    %36 = arith.select %29, %35, %34 : vector<16x1xi1>, vector<16x1xf32>
    %c0_i32_16 = arith.constant 0 : i32
    %37 = vector.broadcast %c0_i32_16 : i32 to vector<16x1xi32>
    %38 = arith.cmpi eq, %27, %37 : vector<16x1xi32>
    %c5_i32 = arith.constant 5 : i32
    %39 = vector.broadcast %c5_i32 : i32 to vector<16x1xi32>
    %40 = arith.cmpi slt, %27, %39 : vector<16x1xi32>
    %c5_i32_17 = arith.constant 5 : i32
    %41 = vector.broadcast %c5_i32_17 : i32 to vector<16x1xi32>
    %42 = arith.cmpi eq, %27, %41 : vector<16x1xi32>
    %cst_18 = arith.constant 3.000000e+00 : f32
    %cst_19 = arith.constant 1.000000e+00 : f32
    %43 = vector.broadcast %cst_18 : f32 to vector<16x1xf32>
    %44 = vector.broadcast %cst_19 : f32 to vector<16x1xf32>
    %45 = arith.select %42, %43, %44 : vector<16x1xi1>, vector<16x1xf32>
    %cst_20 = arith.constant 1.000000e+00 : f32
    %46 = vector.broadcast %cst_20 : f32 to vector<16x1xf32>
    %47 = arith.select %40, %46, %45 : vector<16x1xi1>, vector<16x1xf32>
    %cst_21 = arith.constant 1.000000e+00 : f32
    %48 = vector.broadcast %cst_21 : f32 to vector<16x1xf32>
    %49 = arith.select %38, %48, %47 : vector<16x1xi1>, vector<16x1xf32>
    %50 = arith.subf %26, %36 : vector<16x1xf32>
    %51 = arith.mulf %50, %50 : vector<16x1xf32>
    %52 = arith.mulf %49, %51 : vector<16x1xf32>
    %53 = vector.shape_cast %52 : vector<16x1xf32> to vector<1x16x1xf32>
    %cst_22 = arith.constant dense<0.000000e+00> : vector<1xf32>
    %54 = vector.multi_reduction <add>, %53, %cst_22 [1, 2] : vector<1x16x1xf32> to vector<1xf32>
    %55 = vector.shape_cast %54 : vector<1xf32> to vector<1x1x1xf32>
    %56 = vector.extract %55[0, 0, 0] : f32 from vector<1x1x1xf32>
    %c0_23 = arith.constant 0 : index
    %57 = memref.load %arg1[%c0_23] : memref<1xf32, #tpu.memory_space<smem>>
    memref.store %56, %arg1[%c0_23] : memref<1xf32, #tpu.memory_space<smem>>
    return
  }
}

</mosaic_0001>

<bundles_post_ra>
// kernel: _wavelet_reg.1
= control target key start
LH: loop header
LB: loop body
LE: loop exit
PB: predicated region body
PF: predicated region fallthrough
CT: control target
= control target key end

     0   :  { %s137_s0 = inlined_call_operand.vmem [shape: f32[8,128], index: 0, kind: input, shape index: {}]   ;;  %s138_s1 = inlined_call_operand.hbm [shape: f32[1], index: 1, kind: output, shape index: {}]  }
   0x1   :  { %v9_v0 = vld [vmem:[%s137_s0] sm:$0xff] }
   0x2   :  { %6 = vsyncpa [#allocation4], 0  ;;  %s115_s8 = smov 126   ;;  %s116_s9 = smov 122   ;;  %v117_v1 = vmov 0.0   ;;  %v13_v2 = vmul.f32 %v9_v0, %v9_v0  ;;  %v27_v3 = vperm.slane %v9_v0, 1  ;;  %v36_v13 = vlaneseq }
   0x3   :  { %15 = vrot.lane.b32.xlu0 %v9_v0, %s115_s8  ;;  %23 = vrot.lane.b32.xlu1 %v9_v0, %s116_s9  ;;  %10 = vst [vmem:[#allocation2] sm:$0xff] %v117_v1  ;;  %s118_s10 = smov 124   ;;  %v119_v16 = vmov 1.0   ;;  %vm63_vm4 = vcmask 7168   ;;  %s83_s12 = sshll.u32 %s138_s1, 4  ;;  %s84_s12 = int_to_ptr.hbm [resolvable:$true] %s83_s12 }
   0x4   :  { %11 = vst [vmem:[#allocation2 + $0x8] sm:$0xff] %v117_v1  ;;  %v28_v4 = vmul.f32 %v27_v3, %v9_v0  ;;  %v37_v14 = vshrl.u32 %v36_v13, 7  ;;  %s120_s14 = smov [#allocation3]  }
   0x5   :  { %12 = vst [vmem:[#allocation2] sm:$0x1] %v9_v0 }
   0x6   :  { %14 = vst [vmem:[#allocation2 + $0x1] sm:$0x1] %v13_v2  ;;  %vm41_vm0 = vcmp.eq.s32.totalorder %v37_v14, 1  ;;  %vm49_vm1 = vcmp.eq.s32.totalorder %v37_v14, 5  ;;  %vm39_vm2 = vcmp.eq.s32.totalorder %v37_v14, 0  ;;  %vm47_vm3 = vcmp.lt.s32.totalorder %v37_v14, 5 }
   0x7   :  { %29 = vst [vmem:[#allocation2 + $0x3] sm:$0x3c] %v28_v4  ;;  %v43_v15 = vsel %vm41_vm0, 1.0, %v117_v1  ;;  %v51_v17 = vsel %vm49_vm1, 3.0, %v119_v16 }
   0x8   :  { %v45_v18 = vsel %vm39_vm2, 1.4142135, %v43_v15  ;;  %v53_v20 = vsel %vm47_vm3, 1.0, %v51_v17 }
   0x9   :  { %v55_v24 = vsel %vm39_vm2, 1.0, %v53_v20 }
   0xb   :  { %19 = vrot.lane.b32.xlu0 %v9_v0, %s118_s10 }
   0xe   :  { %v31_v5 = vld [vmem:[#allocation2 + $0x8] sm:$0xff] }
   0xf   :  { %34 = vadd.xlane.f32.xlu2 %v31_v5 }
  0x75   :  { %v16_v6 = vpop.permute.xlu0 %15  ;;  %v24_v7 = vpop.permute.xlu1 %23 }
  0x76   :  { %v17_v8 = vmul.f32 %v16_v6, %v9_v0  ;;  %v25_v9 = vmul.f32 %v24_v7, %v9_v0 }
  0x78   :  { %18 = vst [vmem:[#allocation2 + $0x2] sm:$0x1] %v17_v8 }
  0x79   :  { %26 = vst [vmem:[#allocation2 + $0x4] sm:$0x1] %v25_v9 }
  0x7d   :  { %v20_v10 = vpop.permute.xlu0 %19 }
  0x7e   :  { %v21_v11 = vmul.f32 %v20_v10, %v9_v0 }
  0x80   :  { %22 = vst [vmem:[#allocation2 + $0x3] sm:$0x1] %v21_v11 }
  0x82   :  { %v35_v19 = vpop.xlane.xlu2 %34 }
  0x83   :  { %v60_v23 = vmul.f32 %v35_v19, %v35_v19 }
  0x85   :  { %v65_v27 = vsel %vm63_vm4, %v60_v23, 0.0 }
  0x87   :  { %v30_v12 = vld [vmem:[#allocation2] sm:$0xff] }
  0x88   :  { %32 = vadd.xlane.f32.xlu1 %v30_v12 }
  0xfb   :  { %v33_v21 = vpop.xlane.xlu1 %32 }
  0xfc   :  { %v57_v22 = vsub.f32 %v33_v21, %v45_v18 }
  0xfe   :  { %v59_v25 = vmul.f32 %v57_v22, %v57_v22 }
 0x100   :  { %v61_v26 = vmul.f32 %v59_v25, %v55_v24 }
 0x102   :  { %v64_v28 = vsel %vm63_vm4, %v61_v26, 0.0 }
 0x103   :  { %v66_v29 = vadd.f32 %v65_v27, %v64_v28 }
 0x105   :  { %67 = vadd.xlane.f32.xlu2 %v66_v29 }
 0x178   :  { %v68_v30 = vpop.xlane.xlu2 %67 }
 0x179   :  { %v69_v31 = vrot.slane %v68_v30, 4 }
 0x17b   :  { %v70_v32 = vadd.f32 %v69_v31, %v68_v30 }
 0x17d   :  { %v71_v33 = vrot.slane %v70_v32, 2 }
 0x17f   :  { %v72_v34 = vadd.f32 %v71_v33, %v70_v32 }
 0x181   :  { %v73_v35 = vrot.slane %v72_v34, 1 }
 0x183   :  { %v74_v36 = vadd.f32 %v73_v35, %v72_v34 }
 0x185   :  { %93 = vpush %v74_v36 }
 0x1b6   :  { %s94_s13 = spop %93 }
 0x1b7   :  { %77 = sst [smem:[#allocation3]] %s94_s13 }
 0x1b8   :  { %86 = dma.smem_to_hbm %s120_s14, 16, %s84_s12, [#allocation4]  }
 0x1b9   :  { %113 = dma.done.wait [#allocation4], 16  }
 0x1ba   :  { %114 = vsyncadd [#allocation4], 4294967280 }
 0x1bb   :  { %91 = sfence }
 0x1bc   :  { %92 = vsyncpa [#allocation4], 1 }

</bundles_post_ra>
